<compile_context>
chip_gen: v6e
topology: v6e:2x2x1
jax: 0.10.0
libtpu: 0.0.40
codegen_flags: <defaults>
</compile_context>

<pallas_src>
import jax
import jax.numpy as jnp
from jax.experimental import pallas as pl
from jax.experimental.pallas import tpu as pltpu

_LANES = 128


def identity_kernel(x_ref, o_ref):
    # Whole-tile copy: one unmasked vld / vst stream per vreg, no compute.
    o_ref[...] = x_ref[...]


def _sublanes_for(dtype):
    # Sublane packing: 8 rows for 4-byte, 16 for 2-byte, 32 for 1-byte dtypes.
    itemsize = jnp.dtype(dtype).itemsize
    return max(8, 32 // itemsize)


def _copy_lane_dense(x2d, *, target_block_bytes=2 * 1024 * 1024):
    """Streaming copy of a (rows, 128) slab with ~2 MiB dtype-aware tiles."""
    rows, lanes = x2d.shape
    dtype = x2d.dtype
    itemsize = jnp.dtype(dtype).itemsize
    sub = _sublanes_for(dtype)

    # Tile height targeting ~target_block_bytes per block, rounded to the
    # dtype's sublane packing; never (much) taller than the array itself.
    tr = target_block_bytes // (lanes * itemsize)
    tr = max(sub, (tr // sub) * sub)
    rows_rounded = pl.cdiv(rows, sub) * sub
    tr = min(tr, rows_rounded)

    block_bytes = tr * lanes * itemsize
    # Double-buffered input + output (~4x block bytes) plus slack.  Explicit
    # so larger tiles stay safe under v5e's 16 MiB default scoped VMEM limit
    # without over-asking on v7x (64 MiB physical).
    vmem_limit = int(min(4 * block_bytes + (4 << 20), 64 << 20))

    return pl.pallas_call(
        identity_kernel,
        out_shape=jax.ShapeDtypeStruct((rows, lanes), dtype),
        # Ragged last block (rows % tr != 0) is masked automatically by Pallas
        # instead of padding rows to a tile multiple in the wrapper.
        grid=(pl.cdiv(rows, tr),),
        in_specs=[pl.BlockSpec((tr, lanes), lambda i: (i, 0))],
        out_specs=pl.BlockSpec((tr, lanes), lambda i: (i, 0)),
        compiler_params=pltpu.CompilerParams(
            # "parallel" lets the single copy axis shard across both
            # TensorCores on megacore parts (v7x).
            dimension_semantics=("parallel",),
            vmem_limit_bytes=vmem_limit,
        ),
    )(x2d)


def identity_pallas(x):
    """Identity (copy) of `x` via a lane-dense Pallas streaming kernel."""
    orig_shape, dtype = x.shape, x.dtype
    n = x.size
    if n == 0:
        return x

    flat = x.reshape(-1)

    if n % _LANES == 0:
        # Fast path (common case): reshape to (rows, 128) is metadata-only;
        # no pad and no trailing slice -> exactly one HBM read + one write.
        out2d = _copy_lane_dense(flat.reshape(n // _LANES, _LANES))
        return out2d.reshape(orig_shape)

    # Rare fallback: element count not a multiple of 128.  Pad once to a
    # lane-dense slab, copy, slice the valid prefix back out.
    rows = pl.cdiv(n, _LANES)
    n_pad = rows * _LANES
    flat = jnp.pad(flat, (0, n_pad - n))
    out2d = _copy_lane_dense(flat.reshape(rows, _LANES))
    return out2d.reshape(-1)[:n].reshape(orig_shape)


if __name__ == "__main__":
    # Small shapes consistent with the module's forward (any tensor works).
    B, C, H, W = 2, 4, 16, 16
    key = jax.random.PRNGKey(0)
    x = jax.random.normal(key, (B, C, H, W), jnp.float32)

    out = identity_pallas(x)
    out = jax.block_until_ready(out)

    assert out.shape == x.shape
    assert out.dtype == x.dtype
    # Deterministic finite data, so exact equality is the right check here.
    assert jnp.array_equal(out, x), float(jnp.max(jnp.abs(out - x)))
    print("KERNEL_OK")
</pallas_src>

<mosaic_0001>
module attributes {stable_mosaic.version = 11 : i64} {
  func.func @identity_kernel(%arg0: i32, %arg1: memref<16x128xf32, #tpu.memory_space<vmem>>, %arg2: memref<16x128xf32, #tpu.memory_space<vmem>>) attributes {dimension_semantics = [#tpu.dimension_semantics<parallel>], iteration_bounds = array<i64: 1>, scalar_prefetch = 0 : i64, scratch_operands = 0 : i64, tpu.core_type = #tpu.core_type<tc>, window_params = [{transform_indices = @transform_0, window_bounds = array<i64: 16, 128>}, {transform_indices = @transform_1, window_bounds = array<i64: 16, 128>}]} {
    %c0 = arith.constant 0 : index
    %c0_0 = arith.constant 0 : index
    %0 = vector.load %arg1[%c0, %c0_0] : memref<16x128xf32, #tpu.memory_space<vmem>>, vector<16x128xf32>
    %c0_1 = arith.constant 0 : index
    %c0_2 = arith.constant 0 : index
    %1 = vector.load %arg2[%c0_1, %c0_2] : memref<16x128xf32, #tpu.memory_space<vmem>>, vector<16x128xf32>
    tpu.vector_store %arg2[%c0_1, %c0_2], %0 {strides = array<i32>} : memref<16x128xf32, #tpu.memory_space<vmem>>, vector<16x128xf32>,
    return
  }
  func.func @transform_0(%arg0: i32) -> (i32, i32) {
    %c0_i32 = arith.constant 0 : i32
    %c0_i32_0 = arith.constant 0 : i32
    return %arg0, %c0_i32 : i32, i32
  }
  func.func @transform_1(%arg0: i32) -> (i32, i32) {
    %c0_i32 = arith.constant 0 : i32
    %c0_i32_0 = arith.constant 0 : i32
    return %arg0, %c0_i32 : i32, i32
  }
}

</mosaic_0001>

<bundles_post_ra>
// kernel: tpu_custom_call.1
= control target key start
LH: loop header
LB: loop body
LE: loop exit
PB: predicated region body
PF: predicated region fallthrough
CT: control target
= control target key end

     0   :  { %6 = vsyncpa [#allocation3], 0  ;;  %s112_s0 = inlined_call_operand.hbm [shape: f32[16,128], index: 0, kind: input, shape index: {}]   ;;  %s113_s1 = inlined_call_operand.hbm [shape: f32[16,128], index: 1, kind: output, shape index: {}]  }
   0x1   :  { %7 = vsyncpa [#allocation4], 0  ;;  %s92_s6 = smov [#allocation2]  }
   0x2   :  { %s13_s7 = sshll.u32 %s92_s6, 4  ;;  %s14_s7 = int_to_ptr.vmem [resolvable:$true] %s13_s7 }
   0x3   :  { %s56_s8 = scalar_lea.vmem %s14_s7, 256  ;;  %p61_p1 = scmp.lt.s32.totalorder %s14_s7, %s14_s7 }
   0x4   :  { %p57_p0 = scmp.ne.s32.totalorder %s14_s7, %s56_s8  ;;  %p62_p2 = scmp.lt.s32.totalorder %s56_s8, %s56_s8 }
   0x6   :  { %p63_p3 = por %p62_p2, %p61_p1 }
   0x8   :  { %p64_p4 = pnand %p63_p3, %p57_p0 }
   0xa   :  { %67 = shalt.err (!%p64_p4)
}
   0xb   :  { %s93_s9 = smov 128   ;;  %s94_s10 = smov 8  }
   0xc   :  { %19 = dma.hbm_to_vmem [thread:$0]  %s112_s0, 256, %s14_s7, [#allocation3], %s93_s9, %s93_s9, %s94_s10  }
   0xd   :  { %88 = dma.done.wait [#allocation3], 256  }
   0xe   :  { %89 = vsyncadd [#allocation3], 4294967040  ;;  %s95_s13 = smov [#allocation5]   ;;  %v23_v0 = vld [vmem:[#allocation2] sm:$0xff]  ;;  %v24_v1 = vld [vmem:[#allocation2 + $0x8] sm:$0xff] }
   0xf   :  { %s32_s14 = sshll.u32 %s95_s13, 4  ;;  %25 = vst [vmem:[#allocation5] sm:$0xff] %v23_v0  ;;  %26 = vst [vmem:[#allocation5 + $0x8] sm:$0xff] %v24_v1  ;;  %s33_s14 = int_to_ptr.vmem [resolvable:$true] %s32_s14 }
  0x10   :  { %s68_s15 = scalar_lea.vmem %s33_s14, 256  ;;  %p73_p6 = scmp.lt.s32.totalorder %s33_s14, %s33_s14 }
  0x11   :  { %p69_p5 = scmp.ne.s32.totalorder %s33_s14, %s68_s15  ;;  %p74_p7 = scmp.lt.s32.totalorder %s68_s15, %s68_s15 }
  0x13   :  { %p75_p8 = por %p74_p7, %p73_p6 }
  0x15   :  { %p76_p9 = pnand %p75_p8, %p69_p5 }
  0x17   :  { %79 = shalt.err (!%p76_p9)
}
  0x18   :  { %38 = dma.vmem_to_hbm [thread:$0]  %s33_s14, 256, %s113_s1, [#allocation4], %s93_s9, %s93_s9, %s94_s10  }
  0x19   :  { %90 = dma.done.wait [#allocation4], 256  }
  0x1a   :  { %91 = vsyncadd [#allocation4], 4294967040 }
  0x1b   :  { %42 = vsyncpa [#allocation3], 1 }
  0x1c   :  { %43 = vsyncpa [#allocation4], 1 }

</bundles_post_ra>
